<compile_context>
chip_gen: v6e
topology: v6e:2x2x1
jax: 0.10.0
libtpu: 0.0.40
codegen_flags: <defaults>
</compile_context>

<pallas_src>
import math

import jax
import jax.numpy as jnp
from jax.experimental import pallas as pl
from jax.experimental.pallas import tpu as pltpu

_LANE_CANDIDATES = (1024, 512, 256, 128)
_TARGET_BLOCK_BYTES = 2 * 1024 * 1024   # ~2 MiB per input block (mem-bound sweet spot)
_VMEM_LIMIT_BYTES = 32 * 1024 * 1024    # 12 MiB footprint + headroom; safe on v5e/v6e/v7x


def _mix_kernel(w_ref, f1_ref, f2_ref, o_ref):
    # Raw parameter lives in SMEM; sigmoid is computed in-kernel on a (1,1)
    # vector (one EUP exp + one divide per grid step, hidden under HBM traffic)
    # and broadcast over the tile.
    w_vec = jnp.full((1, 1), w_ref[0], dtype=jnp.float32)
    mix = 1.0 / (1.0 + jnp.exp(-w_vec))                 # sigmoid(w)
    f1 = f1_ref[...]
    f2 = f2_ref[...]
    # f2 + mix*(f1 - f2) == f1*mix + f2*(1-mix), one fewer vector multiply.
    o_ref[...] = (f2 + (f1 - f2) * mix).astype(o_ref.dtype)


def _round_up(x, m):
    return ((x + m - 1) // m) * m


def _choose_tile_rows(rows, sub, target_rows):
    """Sublane-aligned tile rows <= target; prefer an even grid count (v7x dual-TC)."""
    if rows <= target_rows:
        return rows                                     # single full-extent block
    tile = max(sub, (min(target_rows, rows) // sub) * sub)
    steps = math.ceil(rows / tile)
    if steps > 1 and steps % 2:
        cand = min(tile, _round_up(math.ceil(rows / (steps + 1)), sub))
        if cand >= sub and math.ceil(rows / cand) % 2 == 0:
            tile = cand
    return tile


def _mix_pallas_2d(f1_2d, f2_2d, w_f32):
    """Run the mix kernel on a lane-dense (rows, lane) slab."""
    rows, lane = f1_2d.shape
    dtype = f1_2d.dtype
    itemsize = jnp.dtype(dtype).itemsize
    sub = max(8, 32 // itemsize)                        # 8 for f32, 16 for bf16
    target_rows = max(sub, (_TARGET_BLOCK_BYTES // itemsize) // lane)
    tile_rows = _choose_tile_rows(rows, sub, target_rows)
    grid = (pl.cdiv(rows, tile_rows),)                  # ragged last block is masked

    return pl.pallas_call(
        _mix_kernel,
        out_shape=jax.ShapeDtypeStruct((rows, lane), dtype),
        grid_spec=pltpu.PrefetchScalarGridSpec(
            num_scalar_prefetch=0,
            grid=grid,
            in_specs=[
                pl.BlockSpec(memory_space=pltpu.SMEM),              # raw w scalar
                pl.BlockSpec((tile_rows, lane), lambda i: (i, 0)),  # fea1 tile
                pl.BlockSpec((tile_rows, lane), lambda i: (i, 0)),  # fea2 tile
            ],
            out_specs=pl.BlockSpec((tile_rows, lane), lambda i: (i, 0)),
        ),
        compiler_params=pltpu.CompilerParams(
            dimension_semantics=("parallel",),
            vmem_limit_bytes=_VMEM_LIMIT_BYTES,
        ),
    )(w_f32, f1_2d, f2_2d)


def mix_pallas(fea1, fea2, w):
    """fea1, fea2: same-shape feature maps (e.g. NCHW).  w: shape (1,) parameter."""
    assert fea1.shape == fea2.shape and fea1.dtype == fea2.dtype
    orig_shape = fea1.shape
    dtype = fea1.dtype
    total = int(fea1.size)

    w_f32 = jnp.asarray(w, jnp.float32).reshape((1,))
    if total == 0:
        return fea1

    # Widest lane-dense last dim that divides the element count -> zero-copy
    # reshape, no padding, no extra HBM passes.
    lane = None
    for cand in _LANE_CANDIDATES:
        if total % cand == 0:
            lane = cand
            break

    f1_flat = fea1.reshape(-1)
    f2_flat = fea2.reshape(-1)

    if lane is not None:
        out_flat = _mix_pallas_2d(
            f1_flat.reshape(total // lane, lane),
            f2_flat.reshape(total // lane, lane),
            w_f32,
        ).reshape(-1)
        return out_flat.reshape(orig_shape)

    # Unaligned element count: run Pallas on the 128-aligned prefix and finish
    # the (<128-element) tail with a trivial XLA op — no full-array pad/slice.
    mix = jax.nn.sigmoid(w_f32[0])
    prefix = (total // 128) * 128
    if prefix == 0:
        out_flat = (f2_flat + (f1_flat - f2_flat) * mix).astype(dtype)
        return out_flat.reshape(orig_shape)

    lane = 128
    for cand in _LANE_CANDIDATES:
        if prefix % cand == 0:
            lane = cand
            break
    head = _mix_pallas_2d(
        f1_flat[:prefix].reshape(prefix // lane, lane),
        f2_flat[:prefix].reshape(prefix // lane, lane),
        w_f32,
    ).reshape(-1)
    tail = (f2_flat[prefix:] + (f1_flat[prefix:] - f2_flat[prefix:]) * mix).astype(dtype)
    return jnp.concatenate([head, tail]).reshape(orig_shape)


if __name__ == "__main__":
    # Deterministic parameter init, matching Mix(m=-0.8).
    w = jnp.array([-0.8], dtype=jnp.float32)

    key = jax.random.PRNGKey(0)
    k1, k2 = jax.random.split(key)
    # Small NCHW feature maps.
    fea1 = jax.random.normal(k1, (2, 4, 16, 16), dtype=jnp.float32)
    fea2 = jax.random.normal(k2, (2, 4, 16, 16), dtype=jnp.float32)

    out = jax.block_until_ready(mix_pallas(fea1, fea2, w))

    # Pure-JAX reference check (PyTorch formula).
    mix_factor = jax.nn.sigmoid(w[0])
    ref = fea1 * mix_factor + fea2 * (1.0 - mix_factor)
    assert out.shape == fea1.shape and out.dtype == fea1.dtype
    assert jnp.allclose(out, ref, atol=1e-6, rtol=1e-5)

    print("KERNEL_OK")
</pallas_src>

<mosaic_0001>
module attributes {stable_mosaic.version = 11 : i64} {
  func.func @_mix_kernel(%arg0: i32, %arg1: memref<1xf32, #tpu.memory_space<smem>>, %arg2: memref<2x1024xf32, #tpu.memory_space<vmem>>, %arg3: memref<2x1024xf32, #tpu.memory_space<vmem>>, %arg4: memref<2x1024xf32, #tpu.memory_space<vmem>>) attributes {dimension_semantics = [#tpu.dimension_semantics<parallel>], iteration_bounds = array<i64: 1>, scalar_prefetch = 0 : i64, scratch_operands = 0 : i64, tpu.core_type = #tpu.core_type<tc>, window_params = [{transform_indices = @transform_0, window_bounds = array<i64: 1>}, {transform_indices = @transform_1, window_bounds = array<i64: 2, 1024>}, {transform_indices = @transform_2, window_bounds = array<i64: 2, 1024>}, {transform_indices = @transform_3, window_bounds = array<i64: 2, 1024>}]} {
    %c0 = arith.constant 0 : index
    %0 = memref.load %arg1[%c0] : memref<1xf32, #tpu.memory_space<smem>>
    %1 = vector.broadcast %0 : f32 to vector<1x1xf32>
    %cst = arith.constant 0.000000e+00 : f32
    %2 = vector.broadcast %cst : f32 to vector<1x1xf32>
    %3 = arith.subf %2, %1 : vector<1x1xf32>
    %4 = math.exp %3 : vector<1x1xf32>
    %cst_0 = arith.constant 1.000000e+00 : f32
    %5 = vector.broadcast %cst_0 : f32 to vector<1x1xf32>
    %6 = arith.addf %5, %4 : vector<1x1xf32>
    %cst_1 = arith.constant 1.000000e+00 : f32
    %7 = vector.broadcast %cst_1 : f32 to vector<1x1xf32>
    %8 = arith.divf %7, %6 : vector<1x1xf32>
    %c0_2 = arith.constant 0 : index
    %c0_3 = arith.constant 0 : index
    %9 = vector.load %arg2[%c0_2, %c0_3] : memref<2x1024xf32, #tpu.memory_space<vmem>>, vector<2x1024xf32>
    %c0_4 = arith.constant 0 : index
    %c0_5 = arith.constant 0 : index
    %10 = vector.load %arg3[%c0_4, %c0_5] : memref<2x1024xf32, #tpu.memory_space<vmem>>, vector<2x1024xf32>
    %11 = arith.subf %9, %10 : vector<2x1024xf32>
    %12 = vector.broadcast %8 : vector<1x1xf32> to vector<2x1024xf32>
    %13 = arith.mulf %11, %12 : vector<2x1024xf32>
    %14 = arith.addf %10, %13 : vector<2x1024xf32>
    %c0_6 = arith.constant 0 : index
    %c0_7 = arith.constant 0 : index
    %15 = vector.load %arg4[%c0_6, %c0_7] : memref<2x1024xf32, #tpu.memory_space<vmem>>, vector<2x1024xf32>
    tpu.vector_store %arg4[%c0_6, %c0_7], %14 {strides = array<i32>} : memref<2x1024xf32, #tpu.memory_space<vmem>>, vector<2x1024xf32>,
    return
  }
  func.func @transform_0(%arg0: i32) -> i32 {
    %c0_i32 = arith.constant 0 : i32
    %c0_i32_0 = arith.constant 0 : i32
    return %c0_i32 : i32
  }
  func.func @transform_1(%arg0: i32) -> (i32, i32) {
    %c0_i32 = arith.constant 0 : i32
    %c0_i32_0 = arith.constant 0 : i32
    return %arg0, %c0_i32 : i32, i32
  }
  func.func @transform_2(%arg0: i32) -> (i32, i32) {
    %c0_i32 = arith.constant 0 : i32
    %c0_i32_0 = arith.constant 0 : i32
    return %arg0, %c0_i32 : i32, i32
  }
  func.func @transform_3(%arg0: i32) -> (i32, i32) {
    %c0_i32 = arith.constant 0 : i32
    %c0_i32_0 = arith.constant 0 : i32
    return %arg0, %c0_i32 : i32, i32
  }
}

</mosaic_0001>

<bundles_post_ra>
// kernel: tpu_custom_call.1
= control target key start
LH: loop header
LB: loop body
LE: loop exit
PB: predicated region body
PF: predicated region fallthrough
CT: control target
= control target key end

     0   :  { %9 = vsyncpa [#allocation4], 0  ;;  %s184_s0 = inlined_call_operand.<no memory space> [shape: f32[1], index: 0, kind: input, shape index: {}]   ;;  %s185_s1 = inlined_call_operand.hbm [shape: f32[2,1024], index: 1, kind: input, shape index: {}]   ;;  %s186_s2 = inlined_call_operand.hbm [shape: f32[2,1024], index: 2, kind: input, shape index: {}]   ;;  %s187_s3 = inlined_call_operand.hbm [shape: f32[2,1024], index: 3, kind: output, shape index: {}]  }
   0x1   :  { %10 = vsyncpa [#allocation7], 0 }
   0x2   :  { %11 = vsyncpa [#allocation5], 0  ;;  %s149_s12 = smov [#allocation3]   ;;  %s150_s14 = smov [#allocation6]  }
   0x3   :  { %s20_s13 = sshll.u32 %s149_s12, 4  ;;  %s30_s15 = sshll.u32 %s150_s14, 4  ;;  %s21_s13 = int_to_ptr.vmem [resolvable:$true] %s20_s13  ;;  %s31_s15 = int_to_ptr.vmem [resolvable:$true] %s30_s15 }
   0x4   :  { %s91_s16 = scalar_lea.vmem %s21_s13, 256  ;;  %p96_p1 = scmp.lt.s32.totalorder %s21_s13, %s21_s13 }
   0x5   :  { %p92_p0 = scmp.ne.s32.totalorder %s21_s13, %s91_s16  ;;  %p97_p2 = scmp.lt.s32.totalorder %s91_s16, %s91_s16 }
   0x7   :  { %p98_p3 = por %p97_p2, %p96_p1 }
   0x9   :  { %p99_p4 = pnand %p98_p3, %p92_p0 }
   0xb   :  { %102 = shalt.err (!%p99_p4)
}
   0xc   :  { %23 = dma.hbm_to_vmem [thread:$0]  %s185_s1, 256, %s21_s13, [#allocation4]  }
   0xd   :  { %s111_s19 = scalar_lea.vmem %s31_s15, 256  ;;  %p116_p6 = scmp.lt.s32.totalorder %s31_s15, %s31_s15 }
   0xe   :  { %p112_p5 = scmp.ne.s32.totalorder %s31_s15, %s111_s19  ;;  %p117_p7 = scmp.lt.s32.totalorder %s111_s19, %s111_s19 }
  0x10   :  { %p118_p8 = por %p117_p7, %p116_p6 }
  0x12   :  { %p119_p9 = pnand %p118_p8, %p112_p5 }
  0x14   :  { %122 = shalt.err (!%p119_p9)
}
  0x15   :  { %33 = dma.hbm_to_vmem [thread:$0]  %s186_s2, 256, %s31_s15, [#allocation7]  }
  0x16   :  { %143 = dma.done.wait [#allocation4], 256  }
  0x17   :  { %144 = vsyncadd [#allocation4], 4294967040 }
  0x18   :  { %145 = dma.done.wait [#allocation7], 256  }
  0x19   :  { %146 = vsyncadd [#allocation7], 4294967040  ;;  %v41_v0 = vstv %s184_s0  ;;  %v48_v5 = vld [vmem:[#allocation3] sm:$0xff]  ;;  %v50_v6 = vld [vmem:[#allocation6] sm:$0xff]  ;;  %s151_s1 = smov [#allocation8]  }
  0x1a   :  { %v42_v1 = vsub.f32 0.0, %v41_v0  ;;  %v49_v7 = vld [vmem:[#allocation3 + $0x8] sm:$0xff]  ;;  %v51_v8 = vld [vmem:[#allocation6 + $0x8] sm:$0xff]  ;;  %v52_v9 = vsub.f32 %v48_v5, %v50_v6  ;;  %s66_s2 = sshll.u32 %s151_s1, 4  ;;  %s67_s2 = int_to_ptr.vmem [resolvable:$true] %s66_s2 }
  0x1b   :  { %v53_v10 = vsub.f32 %v49_v7, %v51_v8  ;;  %s123_s0 = scalar_lea.vmem %s67_s2, 256  ;;  %p128_p11 = scmp.lt.s32.totalorder %s67_s2, %s67_s2 }
  0x1c   :  { %v43_v2 = vmul.f32 1.442695, %v42_v1  ;;  %p124_p10 = scmp.ne.s32.totalorder %s67_s2, %s123_s0  ;;  %p129_p12 = scmp.lt.s32.totalorder %s123_s0, %s123_s0 }
  0x1e   :  { %79 = vpow2.f32 %v43_v2  ;;  %p130_p13 = por %p129_p12, %p128_p11 }
  0x20   :  { %p131_p0 = pnand %p130_p13, %p124_p10 }
  0x2b   :  { %v80_v3 = vpop.eup %79 }
  0x2c   :  { %v45_v4 = vadd.f32 1.0, %v80_v3 }
  0x2e   :  { %81 = vrcp.f32 %v45_v4 }
  0x3b   :  { %v82_v11 = vpop.eup %81 }
  0x3c   :  { %v54_v12 = vmul.f32 %v82_v11, %v52_v9  ;;  %v55_v13 = vmul.f32 %v82_v11, %v53_v10 }
  0x3e   :  { %v56_v14 = vadd.f32 %v54_v12, %v50_v6  ;;  %v57_v15 = vadd.f32 %v55_v13, %v51_v8 }
  0x40   :  { %58 = vst [vmem:[#allocation8] sm:$0xff] %v56_v14  ;;  %59 = vst [vmem:[#allocation8 + $0x8] sm:$0xff] %v57_v15 }
  0x41   :  { %134 = shalt.err (!%p131_p0)
}
  0x42   :  { %69 = dma.vmem_to_hbm [thread:$0]  %s67_s2, 256, %s187_s3, [#allocation5]  }
  0x43   :  { %147 = dma.done.wait [#allocation5], 256  }
  0x44   :  { %148 = vsyncadd [#allocation5], 4294967040 }
  0x45   :  { %73 = vsyncpa [#allocation4], 1 }
  0x46   :  { %74 = vsyncpa [#allocation7], 1 }
  0x47   :  { %75 = vsyncpa [#allocation5], 1 }

</bundles_post_ra>
